<compile_context>
chip_gen: v5e
topology: v5e:2x2
jax: 0.10.0
libtpu: 0.0.40
codegen_flags: <defaults>
</compile_context>

<pallas_src>
import functools

import jax
import jax.numpy as jnp
from jax import lax
from jax.experimental import pallas as pl
from jax.experimental.pallas import tpu as pltpu


# ---------------- Pallas kernel ----------------

def conv_relu_pool_kernel(p00_ref, p01_ref, p10_ref, p11_ref, w_ref, b_ref, o_ref):
    """Fused conv(im2col matmul) + bias + ReLU + 2x2 max-pool for one row tile.

    p??_ref : (TM, K_pad)    im2col patches of the 4 corners of each pool window
    w_ref   : (K_pad, C_pad) zero-padded conv weights, resident across the grid
    b_ref   : (1, C_pad)     zero-padded bias, resident
    o_ref   : (TM, C_pad)    pooled output (lane-dense, C_pad multiple of 128)
    """
    w = w_ref[...]
    d00 = jnp.dot(p00_ref[...], w, preferred_element_type=jnp.float32)
    d01 = jnp.dot(p01_ref[...], w, preferred_element_type=jnp.float32)
    d10 = jnp.dot(p10_ref[...], w, preferred_element_type=jnp.float32)
    d11 = jnp.dot(p11_ref[...], w, preferred_element_type=jnp.float32)
    # max-pool before bias/ReLU (exact: bias-add and ReLU are monotone).
    m = jnp.maximum(jnp.maximum(d00, d01), jnp.maximum(d10, d11))
    o_ref[...] = jnp.maximum(m + b_ref[...], 0.0).astype(o_ref.dtype)


# ---------------- Wrapper ----------------

def _round_up(x, m):
    return (x + m - 1) // m * m


def _pick_tile_m(mp):
    # ~5 KiB of double-buffered VMEM per row at K_pad = C_pad = 128, so a
    # 2048-row tile is ~10 MiB: comfortably inside v7x's 32 MiB scoped VMEM
    # (and trivially inside v5e/v6e's 128 MiB).
    cap = 2048  # multiple of 8
    if mp <= cap:
        return mp          # block == full dim is always legal
    return cap             # Pallas masks the partial last block


def conv_block_forward(x_nchw, weight, bias, *, tile_m=None):
    """x_nchw: (N, Cin, H, W); weight: (Cout, Cin, 5, 5); bias: (Cout,)."""
    N, Cin, H, W = x_nchw.shape
    Cout, _, KH, KW = weight.shape
    OH, OW = H - KH + 1, W - KW + 1        # stride 1, no padding
    PH, PW = OH // 2, OW // 2              # MaxPool2d(2,2), floor mode (PyTorch default)

    K = Cin * KH * KW
    K_pad = _round_up(K, 128)
    C_pad = _round_up(Cout, 128)
    Mp = N * PH * PW

    x_nhwc = jnp.transpose(x_nchw, (0, 2, 3, 1)).astype(jnp.float32)

    # im2col patches for each of the four positions of every 2x2 pooling
    # window, feature order (kh, kw, ci), zero-padded to K_pad lanes.
    def corner(di, dj):
        cols = []
        for kh in range(KH):
            for kw in range(KW):
                cols.append(
                    x_nhwc[:, di + kh: di + kh + 2 * PH: 2,
                              dj + kw: dj + kw + 2 * PW: 2, :])
        c = jnp.concatenate(cols, axis=-1).reshape(Mp, K)      # (Mp, K)
        return jnp.pad(c, ((0, 0), (0, K_pad - K)))

    p00, p01, p10, p11 = corner(0, 0), corner(0, 1), corner(1, 0), corner(1, 1)

    # weight[(kh*KW+kw)*Cin + ci, co] layout, zero-padded to (K_pad, C_pad).
    w_mat = jnp.transpose(weight, (2, 3, 1, 0)).reshape(K, Cout).astype(jnp.float32)
    w_pad = jnp.pad(w_mat, ((0, K_pad - K), (0, C_pad - Cout)))
    b_pad = jnp.pad(bias.reshape(1, Cout).astype(jnp.float32),
                    ((0, 0), (0, C_pad - Cout)))

    TM = tile_m if tile_m is not None else _pick_tile_m(Mp)
    grid = (pl.cdiv(Mp, TM),)

    cost = pl.CostEstimate(
        flops=2 * 4 * Mp * K_pad * C_pad,
        transcendentals=0,
        bytes_accessed=(4 * Mp * K_pad + K_pad * C_pad + C_pad + Mp * C_pad) * 4)

    patch_spec = pl.BlockSpec((TM, K_pad), lambda i: (i, 0))
    out = pl.pallas_call(
        conv_relu_pool_kernel,
        out_shape=jax.ShapeDtypeStruct((Mp, C_pad), jnp.float32),
        grid_spec=pltpu.PrefetchScalarGridSpec(
            num_scalar_prefetch=0,
            grid=grid,
            in_specs=[patch_spec, patch_spec, patch_spec, patch_spec,
                      pl.BlockSpec((K_pad, C_pad), lambda i: (0, 0)),   # resident
                      pl.BlockSpec((1, C_pad), lambda i: (0, 0))],      # resident
            out_specs=pl.BlockSpec((TM, C_pad), lambda i: (i, 0))),
        compiler_params=pltpu.CompilerParams(
            dimension_semantics=("parallel",),
            vmem_limit_bytes=32 * 1024 * 1024),
        cost_estimate=cost,
    )(p00, p01, p10, p11, w_pad, b_pad)

    pooled = out[:, :Cout].reshape(N, PH, PW, Cout)
    # NCHW to match the PyTorch module's output layout.  (If the downstream
    # consumer is channel-last, this transpose can be dropped.)
    return jnp.transpose(pooled, (0, 3, 1, 2))


# ---------------- Reference (pure JAX) ----------------

def conv_block_reference(x_nchw, weight, bias):
    y = lax.conv_general_dilated(
        x_nchw, weight, window_strides=(1, 1), padding="VALID",
        dimension_numbers=("NCHW", "OIHW", "NCHW"))
    y = jnp.maximum(y + bias.reshape(1, -1, 1, 1), 0.0)
    y = lax.reduce_window(y, -jnp.inf, lax.max,
                          window_dimensions=(1, 1, 2, 2),
                          window_strides=(1, 1, 2, 2), padding="VALID")
    return y


if __name__ == "__main__":
    key = jax.random.PRNGKey(0)
    kx, kw, kb = jax.random.split(key, 3)

    N, Cin, H, W = 2, 4, 16, 16
    Cout, KH, KW = 8, 5, 5

    x = jax.random.normal(kx, (N, Cin, H, W), dtype=jnp.float32)

    # Deterministic PyTorch-default-style init: U(-1/sqrt(fan_in), 1/sqrt(fan_in))
    fan_in = Cin * KH * KW
    bound = 1.0 / (fan_in ** 0.5)
    weight = jax.random.uniform(kw, (Cout, Cin, KH, KW), jnp.float32, -bound, bound)
    bias = jax.random.uniform(kb, (Cout,), jnp.float32, -bound, bound)

    # tile_m=24 -> grid=(3,): exercises the tiled, software-pipelined path
    # even at this toy size (auto heuristic would use a single full block).
    fwd = jax.jit(functools.partial(conv_block_forward, tile_m=24))
    out = jax.block_until_ready(fwd(x, weight, bias))

    ref = conv_block_reference(x, weight, bias)
    assert out.shape == ref.shape == (N, Cout, 6, 6)
    assert jnp.allclose(out, ref, atol=1e-4, rtol=1e-4)

    print("KERNEL_OK")
</pallas_src>

<mosaic_0001>
module attributes {stable_mosaic.version = 11 : i64} {
  func.func @conv_relu_pool_kernel(%arg0: i32, %arg1: memref<24x128xf32, #tpu.memory_space<vmem>>, %arg2: memref<24x128xf32, #tpu.memory_space<vmem>>, %arg3: memref<24x128xf32, #tpu.memory_space<vmem>>, %arg4: memref<24x128xf32, #tpu.memory_space<vmem>>, %arg5: memref<128x128xf32, #tpu.memory_space<vmem>>, %arg6: memref<1x128xf32, #tpu.memory_space<vmem>>, %arg7: memref<24x128xf32, #tpu.memory_space<vmem>>) attributes {dimension_semantics = [#tpu.dimension_semantics<parallel>], iteration_bounds = array<i64: 3>, scalar_prefetch = 0 : i64, scratch_operands = 0 : i64, tpu.core_type = #tpu.core_type<tc>, window_params = [{transform_indices = @transform_0, window_bounds = array<i64: 24, 128>}, {transform_indices = @transform_1, window_bounds = array<i64: 24, 128>}, {transform_indices = @transform_2, window_bounds = array<i64: 24, 128>}, {transform_indices = @transform_3, window_bounds = array<i64: 24, 128>}, {pipeline_mode = #tpu.pipeline_mode<synchronous>, transform_indices = @transform_4, window_bounds = array<i64: 128, 128>}, {pipeline_mode = #tpu.pipeline_mode<synchronous>, transform_indices = @transform_5, window_bounds = array<i64: 1, 128>}, {transform_indices = @transform_6, window_bounds = array<i64: 24, 128>}]} {
    %c0 = arith.constant 0 : index
    %c0_0 = arith.constant 0 : index
    %0 = vector.load %arg5[%c0, %c0_0] : memref<128x128xf32, #tpu.memory_space<vmem>>, vector<128x128xf32>
    %c0_1 = arith.constant 0 : index
    %c0_2 = arith.constant 0 : index
    %1 = vector.load %arg1[%c0_1, %c0_2] : memref<24x128xf32, #tpu.memory_space<vmem>>, vector<24x128xf32>
    %cst = arith.constant dense<0.000000e+00> : vector<24x128xf32>
    %2 = tpu.matmul %1, %0, %cst {dimension_numbers = #tpu.dot_dimension_numbers<[1], [0], [0], [1], [0, 0, 1, 1], [], []>} : vector<24x128xf32>, vector<128x128xf32>, vector<24x128xf32> -> vector<24x128xf32>
    %c0_3 = arith.constant 0 : index
    %c0_4 = arith.constant 0 : index
    %3 = vector.load %arg2[%c0_3, %c0_4] : memref<24x128xf32, #tpu.memory_space<vmem>>, vector<24x128xf32>
    %cst_5 = arith.constant dense<0.000000e+00> : vector<24x128xf32>
    %4 = tpu.matmul %3, %0, %cst_5 {dimension_numbers = #tpu.dot_dimension_numbers<[1], [0], [0], [1], [0, 0, 1, 1], [], []>} : vector<24x128xf32>, vector<128x128xf32>, vector<24x128xf32> -> vector<24x128xf32>
    %c0_6 = arith.constant 0 : index
    %c0_7 = arith.constant 0 : index
    %5 = vector.load %arg3[%c0_6, %c0_7] : memref<24x128xf32, #tpu.memory_space<vmem>>, vector<24x128xf32>
    %cst_8 = arith.constant dense<0.000000e+00> : vector<24x128xf32>
    %6 = tpu.matmul %5, %0, %cst_8 {dimension_numbers = #tpu.dot_dimension_numbers<[1], [0], [0], [1], [0, 0, 1, 1], [], []>} : vector<24x128xf32>, vector<128x128xf32>, vector<24x128xf32> -> vector<24x128xf32>
    %c0_9 = arith.constant 0 : index
    %c0_10 = arith.constant 0 : index
    %7 = vector.load %arg4[%c0_9, %c0_10] : memref<24x128xf32, #tpu.memory_space<vmem>>, vector<24x128xf32>
    %cst_11 = arith.constant dense<0.000000e+00> : vector<24x128xf32>
    %8 = tpu.matmul %7, %0, %cst_11 {dimension_numbers = #tpu.dot_dimension_numbers<[1], [0], [0], [1], [0, 0, 1, 1], [], []>} : vector<24x128xf32>, vector<128x128xf32>, vector<24x128xf32> -> vector<24x128xf32>
    %9 = arith.maximumf %2, %4 : vector<24x128xf32>
    %10 = arith.maximumf %6, %8 : vector<24x128xf32>
    %11 = arith.maximumf %9, %10 : vector<24x128xf32>
    %c0_12 = arith.constant 0 : index
    %c0_13 = arith.constant 0 : index
    %12 = vector.load %arg6[%c0_12, %c0_13] : memref<1x128xf32, #tpu.memory_space<vmem>>, vector<1x128xf32>
    %13 = vector.broadcast %12 : vector<1x128xf32> to vector<24x128xf32>
    %14 = arith.addf %11, %13 : vector<24x128xf32>
    %cst_14 = arith.constant 0.000000e+00 : f32
    %15 = vector.broadcast %cst_14 : f32 to vector<24x128xf32>
    %16 = arith.maximumf %14, %15 : vector<24x128xf32>
    %c0_15 = arith.constant 0 : index
    %c0_16 = arith.constant 0 : index
    %17 = vector.load %arg7[%c0_15, %c0_16] : memref<24x128xf32, #tpu.memory_space<vmem>>, vector<24x128xf32>
    tpu.vector_store %arg7[%c0_15, %c0_16], %16 {strides = array<i32>} : memref<24x128xf32, #tpu.memory_space<vmem>>, vector<24x128xf32>,
    return
  }
  func.func @transform_0(%arg0: i32) -> (i32, i32) {
    %c0_i32 = arith.constant 0 : i32
    %c0_i32_0 = arith.constant 0 : i32
    return %arg0, %c0_i32 : i32, i32
  }
  func.func @transform_1(%arg0: i32) -> (i32, i32) {
    %c0_i32 = arith.constant 0 : i32
    %c0_i32_0 = arith.constant 0 : i32
    return %arg0, %c0_i32 : i32, i32
  }
  func.func @transform_2(%arg0: i32) -> (i32, i32) {
    %c0_i32 = arith.constant 0 : i32
    %c0_i32_0 = arith.constant 0 : i32
    return %arg0, %c0_i32 : i32, i32
  }
  func.func @transform_3(%arg0: i32) -> (i32, i32) {
    %c0_i32 = arith.constant 0 : i32
    %c0_i32_0 = arith.constant 0 : i32
    return %arg0, %c0_i32 : i32, i32
  }
  func.func @transform_4(%arg0: i32) -> (i32, i32) {
    %c0_i32 = arith.constant 0 : i32
    %c0_i32_0 = arith.constant 0 : i32
    %c0_i32_1 = arith.constant 0 : i32
    return %c0_i32, %c0_i32_0 : i32, i32
  }
  func.func @transform_5(%arg0: i32) -> (i32, i32) {
    %c0_i32 = arith.constant 0 : i32
    %c0_i32_0 = arith.constant 0 : i32
    %c0_i32_1 = arith.constant 0 : i32
    return %c0_i32, %c0_i32_0 : i32, i32
  }
  func.func @transform_6(%arg0: i32) -> (i32, i32) {
    %c0_i32 = arith.constant 0 : i32
    %c0_i32_0 = arith.constant 0 : i32
    return %arg0, %c0_i32 : i32, i32
  }
}

</mosaic_0001>

<bundles_post_ra>
// kernel: conv_block_forward.1
= control target key start
LH: loop header
LB: loop body
LE: loop exit
PB: predicated region body
PF: predicated region fallthrough
CT: control target
= control target key end

     0   :  { %s631_s21 = smov 0   ;;  %s727_s0 = inlined_call_operand.vmem [shape: f32[72,128], index: 0, kind: input, shape index: {}]   ;;  %s728_s1 = inlined_call_operand.vmem [shape: f32[72,128], index: 1, kind: input, shape index: {}]   ;;  %s729_s2 = inlined_call_operand.vmem [shape: f32[72,128], index: 2, kind: input, shape index: {}]   ;;  %s730_s3 = inlined_call_operand.vmem [shape: f32[72,128], index: 3, kind: input, shape index: {}]   ;;  %s731_s4 = inlined_call_operand.vmem [shape: f32[128,128], index: 4, kind: input, shape index: {}]   ;;  %s732_s5 = inlined_call_operand.vmem [shape: f32[1,128], index: 5, kind: input, shape index: {}]   ;;  %s733_s6 = inlined_call_operand.vmem [shape: f32[72,128], index: 6, kind: output, shape index: {}]  }
   0x1 LB: > { %s567_s22 = sadd.s32 4294967295, %s594_s21   ;;  %p571_p0 = scmp.ge.s32.totalorder %s594_s21, 1  ;;  %s594_s21 = sphi %s631_s21, %s16_s21  }
   0x2   : > { %p246_p1 = scmp.lt.s32.totalorder %s594_s21, 4 }
   0x4   : > { %p247_p2 = pnand %p571_p0, %p246_p1 }
   0x5   : > { %s291_s13 = smul.u32 (!%p247_p2), 3, %s567_s22 }
   0x6   : > { %250 = sbr.rel (%p247_p2) target bundleno = 200 (0xc8), region = 44 }
   0x7   : > { %p292_p3 = scmp.lt.s32.totalorder (!%p247_p2), %s291_s13, 8 }
   0xb   : > { %v336_v0 = vld [vmem:[%s731_s4 + $0x78] sm:$0xff]  ;;  %v335_v1 = vld [vmem:[%s731_s4 + $0x70] sm:$0xff]  ;;  %v334_v2 = vld [vmem:[%s731_s4 + $0x68] sm:$0xff]  ;;  %s735_s13 = smov (!%p292_p3, %s291_s13), 8 }
   0xc   : > { %398 = vmatpush.msra.mxu2 %v336_v0  ;;  %427 = vmatpush.msra.mxu3 %v336_v0  ;;  %v333_v3 = vld [vmem:[%s731_s4 + $0x60] sm:$0xff]  ;;  %v332_v4 = vld [vmem:[%s731_s4 + $0x58] sm:$0xff]  ;;  %v331_v5 = vld [vmem:[%s731_s4 + $0x50] sm:$0xff]  ;;  %s680_s27 = sshll.u32 %s735_s13, 3 }
   0xd   : > { %340 = vmatpush.msra.mxu0 %v336_v0  ;;  %369 = vmatpush.msra.mxu1 %v336_v0  ;;  %v330_v6 = vld [vmem:[%s731_s4 + $0x48] sm:$0xff]  ;;  %v329_v7 = vld [vmem:[%s731_s4 + $0x40] sm:$0xff]  ;;  %v328_v8 = vld [vmem:[%s731_s4 + $0x38] sm:$0xff]  ;;  %s692_s10 = scalar_lea.vmem %s729_s2, %s680_s27  ;;  %s698_s13 = scalar_lea.vmem %s730_s3, %s680_s27 }
   0xe   : > { %399 = vmatpush.msra.mxu2 %v335_v1  ;;  %428 = vmatpush.msra.mxu3 %v335_v1  ;;  %v327_v9 = vld [vmem:[%s731_s4 + $0x30] sm:$0xff]  ;;  %v326_v10 = vld [vmem:[%s731_s4 + $0x28] sm:$0xff]  ;;  %v325_v11 = vld [vmem:[%s731_s4 + $0x20] sm:$0xff]  ;;  %s295_s18 = scalar_lea.vmem %s727_s0, %s680_s27  ;;  %s301_s22 = scalar_lea.vmem %s728_s1, %s680_s27 }
   0xf   : > { %341 = vmatpush.msra.mxu0 %v335_v1  ;;  %370 = vmatpush.msra.mxu1 %v335_v1  ;;  %v324_v12 = vld [vmem:[%s731_s4 + $0x18] sm:$0xff]  ;;  %v323_v13 = vld [vmem:[%s731_s4 + $0x10] sm:$0xff]  ;;  %v322_v14 = vld [vmem:[%s731_s4 + $0x8] sm:$0xff]  ;;  %s319_s28 = scalar_lea.vmem %s733_s6, %s680_s27 }
  0x10   : > { %400 = vmatpush.msra.mxu2 %v334_v2  ;;  %429 = vmatpush.msra.mxu3 %v334_v2  ;;  %v321_v15 = vld [vmem:[%s731_s4] sm:$0xff]  ;;  %v396_v20 = vld [vmem:[%s692_s10 + $0x8] sm:$0xff]  ;;  %v397_v24 = vld [vmem:[%s692_s10 + $0x10] sm:$0xff] }
  0x11   : > { %342 = vmatpush.msra.mxu0 %v334_v2  ;;  %371 = vmatpush.msra.mxu1 %v334_v2  ;;  %v395_v16 = vld [vmem:[%s692_s10] sm:$0xff]  ;;  %v425_v21 = vld [vmem:[%s698_s13 + $0x8] sm:$0xff]  ;;  %v426_v25 = vld [vmem:[%s698_s13 + $0x10] sm:$0xff] }
  0x12   : > { %401 = vmatpush.msra.mxu2 %v333_v3  ;;  %430 = vmatpush.msra.mxu3 %v333_v3  ;;  %v424_v17 = vld [vmem:[%s698_s13] sm:$0xff]  ;;  %v338_v22 = vld [vmem:[%s295_s18 + $0x8] sm:$0xff]  ;;  %v339_v26 = vld [vmem:[%s295_s18 + $0x10] sm:$0xff] }
  0x13   : > { %343 = vmatpush.msra.mxu0 %v333_v3  ;;  %372 = vmatpush.msra.mxu1 %v333_v3  ;;  %v337_v18 = vld [vmem:[%s295_s18] sm:$0xff]  ;;  %v367_v23 = vld [vmem:[%s301_s22 + $0x8] sm:$0xff]  ;;  %v368_v27 = vld [vmem:[%s301_s22 + $0x10] sm:$0xff] }
  0x14   : > { %402 = vmatpush.msra.mxu2 %v332_v4  ;;  %431 = vmatpush.msra.mxu3 %v332_v4  ;;  %v366_v19 = vld [vmem:[%s301_s22] sm:$0xff] }
  0x15   : > { %344 = vmatpush.msra.mxu0 %v332_v4  ;;  %373 = vmatpush.msra.mxu1 %v332_v4  ;;  %v587_v34 = vld [vmem:[%s732_s5] ss:$0 sm:$0xff] }
  0x16   : > { %403 = vmatpush.msra.mxu2 %v331_v5  ;;  %432 = vmatpush.msra.mxu3 %v331_v5 }
  0x17   : > { %345 = vmatpush.msra.mxu0 %v331_v5  ;;  %374 = vmatpush.msra.mxu1 %v331_v5 }
  0x18   : > { %404 = vmatpush.msra.mxu2 %v330_v6  ;;  %433 = vmatpush.msra.mxu3 %v330_v6 }
  0x19   : > { %346 = vmatpush.msra.mxu0 %v330_v6  ;;  %375 = vmatpush.msra.mxu1 %v330_v6 }
  0x1a   : > { %405 = vmatpush.msra.mxu2 %v329_v7  ;;  %434 = vmatpush.msra.mxu3 %v329_v7 }
  0x1b   : > { %347 = vmatpush.msra.mxu0 %v329_v7  ;;  %376 = vmatpush.msra.mxu1 %v329_v7 }
  0x1c   : > { %406 = vmatpush.msra.mxu2 %v328_v8  ;;  %435 = vmatpush.msra.mxu3 %v328_v8 }
  0x1d   : > { %348 = vmatpush.msra.mxu0 %v328_v8  ;;  %377 = vmatpush.msra.mxu1 %v328_v8 }
  0x1e   : > { %407 = vmatpush.msra.mxu2 %v327_v9  ;;  %436 = vmatpush.msra.mxu3 %v327_v9 }
  0x1f   : > { %349 = vmatpush.msra.mxu0 %v327_v9  ;;  %378 = vmatpush.msra.mxu1 %v327_v9 }
  0x20   : > { %408 = vmatpush.msra.mxu2 %v326_v10  ;;  %437 = vmatpush.msra.mxu3 %v326_v10 }
  0x21   : > { %350 = vmatpush.msra.mxu0 %v326_v10  ;;  %379 = vmatpush.msra.mxu1 %v326_v10 }
  0x22   : > { %409 = vmatpush.msra.mxu2 %v325_v11  ;;  %438 = vmatpush.msra.mxu3 %v325_v11 }
  0x23   : > { %351 = vmatpush.msra.mxu0 %v325_v11  ;;  %380 = vmatpush.msra.mxu1 %v325_v11 }
  0x24   : > { %410 = vmatpush.msra.mxu2 %v324_v12  ;;  %439 = vmatpush.msra.mxu3 %v324_v12 }
  0x25   : > { %352 = vmatpush.msra.mxu0 %v324_v12  ;;  %381 = vmatpush.msra.mxu1 %v324_v12 }
  0x26   : > { %411 = vmatpush.msra.mxu2 %v323_v13  ;;  %440 = vmatpush.msra.mxu3 %v323_v13 }
  0x27   : > { %353 = vmatpush.msra.mxu0 %v323_v13  ;;  %382 = vmatpush.msra.mxu1 %v323_v13 }
  0x28   : > { %412 = vmatpush.msra.mxu2 %v322_v14  ;;  %441 = vmatpush.msra.mxu3 %v322_v14 }
  0x29   : > { %354 = vmatpush.msra.mxu0 %v322_v14  ;;  %383 = vmatpush.msra.mxu1 %v322_v14 }
  0x2a   : > { %413 = vmatpush.msra.mxu2 %v321_v15  ;;  %442 = vmatpush.msra.mxu3 %v321_v15 }
  0x2b   : > { %414 = vmatmul.f32.vlgmr.msra.gmra.mxu2 %v395_v16  ;;  %443 = vmatmul.f32.vlgmr.msra.gmra.mxu3 %v424_v17 }
  0x2c   : > { %355 = vmatpush.msra.mxu0 %v321_v15  ;;  %384 = vmatpush.msra.mxu1 %v321_v15 }
  0x2d   : > { %356 = vmatmul.f32.vlgmr.msra.gmra.mxu0 %v337_v18  ;;  %385 = vmatmul.f32.vlgmr.msra.gmra.mxu1 %v366_v19 }
  0x33   : > { %417 = vmatmul.f32.gmra.mxu2 %v396_v20  ;;  %446 = vmatmul.f32.gmra.mxu3 %v425_v21 }
  0x35   : > { %359 = vmatmul.f32.gmra.mxu0 %v338_v22  ;;  %388 = vmatmul.f32.gmra.mxu1 %v367_v23 }
  0x3b   : > { %420 = vmatmul.f32.gmra.mxu2 %v397_v24  ;;  %449 = vmatmul.f32.gmra.mxu3 %v426_v25 }
  0x3d   : > { %362 = vmatmul.f32.gmra.mxu0 %v339_v26  ;;  %391 = vmatmul.f32.gmra.mxu1 %v368_v27 }
  0xaa   : > { %v357_v28 = vpop.f32.mrf.mxu0  ;;  %v386_v29 = vpop.f32.mrf.mxu1 }
  0xab   : > { %v453_v30 = vmax.f32 %v357_v28, %v386_v29 }
  0xae   : > { %v415_v31 = vpop.f32.mrf.mxu2  ;;  %v444_v32 = vpop.f32.mrf.mxu3 }
  0xaf   : > { %v456_v33 = vmax.f32 %v415_v31, %v444_v32 }
  0xb1   : > { %v459_v35 = vmax.f32 %v453_v30, %v456_v33 }
  0xb2   : > { %v360_v36 = vpop.f32.mrf.mxu0  ;;  %v389_v37 = vpop.f32.mrf.mxu1 }
  0xb3   : > { %v466_v38 = vadd.f32 %v587_v34, %v459_v35  ;;  %v454_v40 = vmax.f32 %v360_v36, %v389_v37 }
  0xb5   : > { %v469_v39 = vmax.f32 %v466_v38, 0.0 }
  0xb6   : > { %v418_v41 = vpop.f32.mrf.mxu2  ;;  %v447_v42 = vpop.f32.mrf.mxu3 }
  0xb7   : > { %472 = vst [vmem:[%s319_s28] sm:$0xff] %v469_v39  ;;  %v457_v43 = vmax.f32 %v418_v41, %v447_v42 }
  0xb9   : > { %v460_v44 = vmax.f32 %v454_v40, %v457_v43 }
  0xba   : > { %v363_v45 = vpop.f32.mrf.mxu0  ;;  %v392_v46 = vpop.f32.mrf.mxu1 }
  0xbb   : > { %v467_v47 = vadd.f32 %v587_v34, %v460_v44  ;;  %v455_v49 = vmax.f32 %v363_v45, %v392_v46 }
  0xbd   : > { %v470_v48 = vmax.f32 %v467_v47, 0.0 }
  0xbe   : > { %v421_v50 = vpop.f32.mrf.mxu2  ;;  %v450_v51 = vpop.f32.mrf.mxu3 }
  0xbf   : > { %473 = vst [vmem:[%s319_s28 + $0x8] sm:$0xff] %v470_v48  ;;  %v458_v52 = vmax.f32 %v421_v50, %v450_v51 }
  0xc1   : > { %v461_v53 = vmax.f32 %v455_v49, %v458_v52 }
  0xc3   : > { %v468_v54 = vadd.f32 %v587_v34, %v461_v53 }
  0xc5   : > { %v471_v55 = vmax.f32 %v468_v54, 0.0 }
  0xc7   : > { %474 = vst [vmem:[%s319_s28 + $0x10] sm:$0xff] %v471_v55 }
  0xc8 PF: > { %s16_s21 = sadd.s32 1, %s594_s21  }
  0xc9   : > { %p13_p4 = scmp.ge.s32.totalorder %s16_s21, 5  }
  0xcb   :  { %15 = sbr.rel (!%p13_p4) target bundleno = 1 (0x1), region = 83 }

</bundles_post_ra>
